<compile_context>
chip_gen: v5e
topology: v5e:2x2
jax: 0.10.0
libtpu: 0.0.40
codegen_flags: <defaults>
</compile_context>

<pallas_src>
import functools

import jax
import jax.numpy as jnp
from jax.experimental import pallas as pl
from jax.experimental.pallas import tpu as pltpu

_LANE = 128


def _round_up(n, m):
    return ((n + m - 1) // m) * m


def _vmem_budget_bytes():
    """Generation-aware VMEM budget (~85% of physical, capped at 110 MiB)."""
    cap = 64 << 20  # conservative default (v7x per-TensorCore VMEM) if query unavailable
    try:  # capability probe only -- never wraps the pallas_call itself
        cap = int(pltpu.get_tpu_info().vmem_capacity_bytes)
    except Exception:
        pass
    return min(int(cap * 0.85), 110 << 20)


# --------------------------------------------------------------------------- #
# Kernel
# --------------------------------------------------------------------------- #
def dual_seq_kernel(x_ref, w1_ref, b1_ref, d_ref, w2_ref, b2_ref, o_ref, acc_ref,
                    *, hid):
    """One (batch tile i, HID K-tile k) grid step of the 3-layer DualSequential."""
    k = pl.program_id(1)

    @pl.when(k == 0)
    def _init():
        acc_ref[...] = jnp.zeros_like(acc_ref)

    cdt = w1_ref.dtype  # MXU compute dtype (bf16); accumulation stays f32.

    # DualLinear 1: z1 = x @ W1^T + b1   (this k step computes HID cols [k*tk, ...)).
    z1 = jnp.dot(x_ref[...].astype(cdt), w1_ref[...],
                 preferred_element_type=jnp.float32) + b1_ref[...]

    # DualReLU (I_ind=None): elementwise scale by d, in f32.
    z2 = d_ref[...].astype(jnp.float32) * z1

    tk = d_ref.shape[-1]
    if hid % tk != 0:
        # Last K block is partial: columns >= hid of d are undefined HBM reads.
        # Zero them so they contribute nothing to the second matmul.
        col = k * tk + jax.lax.broadcasted_iota(jnp.int32, z2.shape, 1)
        z2 = jnp.where(col < hid, z2, 0.0)

    # DualLinear 2 (reduction over HID): accumulate into the f32 scratch.
    acc_ref[...] += jnp.dot(z2.astype(cdt), w2_ref[...],
                            preferred_element_type=jnp.float32)

    @pl.when(k == pl.num_programs(1) - 1)
    def _finalize():
        o_ref[...] = (acc_ref[...] + b2_ref[...]).astype(o_ref.dtype)


# --------------------------------------------------------------------------- #
# One-time parameter packing (hoisted out of the per-call path)
# --------------------------------------------------------------------------- #
def pack_dual_sequential_params(w1, b1, w2, b2, *, compute_dtype=jnp.bfloat16,
                                tk_h=None):
    """Pack DualSequential [DualLinear, DualReLU, DualLinear] weights once.

    w1: (HID, IN) torch nn.Linear layout; b1: (HID,); w2: (OUT, HID); b2: (OUT,).
    Transposes to (in, out), casts weights to the MXU compute dtype, lane-pads the
    output dim, and (only when HID is K-tiled) zero-pads HID to a multiple of the
    K tile.  Call this ONCE per model; reuse the result for every forward call.
    """
    f32 = jnp.float32
    w1 = jnp.asarray(w1, f32); b1 = jnp.asarray(b1, f32)
    w2 = jnp.asarray(w2, f32); b2 = jnp.asarray(b2, f32)
    HID, IN = w1.shape
    OUT, HID2 = w2.shape
    assert HID2 == HID and b1.shape == (HID,) and b2.shape == (OUT,)

    # Lane-dense output: pad OUT to 128 (256 when already big, for the 256x256 MXU).
    OUT_p = _round_up(OUT, 256) if OUT >= 256 else _round_up(OUT, _LANE)

    budget = _vmem_budget_bytes()
    bpe = jnp.dtype(compute_dtype).itemsize

    if tk_h is None:
        # Single reduction step whenever the (double-buffered) full-HID weights fit
        # in half the VMEM budget; otherwise K-tile HID at 512 (multiple of 256).
        full_w = 2 * (IN * HID + HID * OUT_p) * bpe
        tk_h = HID if full_w <= budget // 2 else 512
    if tk_h >= HID:
        tk_h, n_k = HID, 1           # full-extent HID blocks, no padding/masking
    else:
        n_k = -(-HID // tk_h)
    HID_pk = n_k * tk_h

    w1t = w1.T.astype(compute_dtype)          # (IN, HID)
    w2t = w2.T.astype(compute_dtype)          # (HID, OUT)
    if HID_pk != HID:
        w1t = jnp.zeros((IN, HID_pk), compute_dtype).at[:, :HID].set(w1t)
        b1r = jnp.zeros((1, HID_pk), f32).at[:, :HID].set(b1.reshape(1, HID))
        w2t = jnp.zeros((HID_pk, OUT_p), compute_dtype).at[:HID, :OUT].set(w2t)
    else:
        b1r = b1.reshape(1, HID)
        if OUT_p != OUT:
            w2t = jnp.zeros((HID, OUT_p), compute_dtype).at[:, :OUT].set(w2t)
    b2r = b2.reshape(1, OUT)
    if OUT_p != OUT:
        b2r = jnp.zeros((1, OUT_p), f32).at[:, :OUT].set(b2r)

    return dict(w1t=w1t, b1=b1r, w2t=w2t, b2=b2r,
                IN=IN, HID=HID, OUT=OUT, OUT_p=OUT_p, tk_h=tk_h, n_k=n_k,
                compute_dtype=compute_dtype, vmem_budget=budget)


# --------------------------------------------------------------------------- #
# Forward
# --------------------------------------------------------------------------- #
def dual_sequential_forward(x, d, params, *, out_dtype=None):
    """DualSequential.forward for [input, DualLinear, DualReLU(I_ind=None), DualLinear].

    x: (B, IN) and d: (B, HID) are streamed as-is (no padded HBM copies).
    params comes from pack_dual_sequential_params.  Returns (B, OUT).
    """
    B, IN = x.shape
    HID, OUT, OUT_p = params["HID"], params["OUT"], params["OUT_p"]
    assert IN == params["IN"] and d.shape == (B, HID)
    tk_h, n_k = params["tk_h"], params["n_k"]
    w1t, b1r, w2t, b2r = params["w1t"], params["b1"], params["w2t"], params["b2"]
    out_dtype = x.dtype if out_dtype is None else out_dtype
    budget = params["vmem_budget"]
    bpe_c = jnp.dtype(params["compute_dtype"]).itemsize

    # ---- batch tile: biggest that fits the VMEM budget, >= 2 grid steps so both
    # ---- v7x TensorCores get work, 16-row aligned for bf16 sublane packing ------
    IN_l = _round_up(IN, _LANE)
    tk_l = _round_up(tk_h, _LANE)

    def est(tb):  # conservative per-step VMEM estimate
        return (2 * (IN_l * tk_l + tk_l * OUT_p) * bpe_c           # weight blocks (dbl-buffered)
                + 2 * 8 * (tk_l + OUT_p) * 4                        # biases (sublane-padded)
                + 2 * tb * IN_l * x.dtype.itemsize                  # x tiles
                + 2 * tb * tk_l * d.dtype.itemsize                  # d tiles
                + 2 * tb * OUT_p * jnp.dtype(out_dtype).itemsize    # output tiles
                + tb * OUT_p * 4                                    # f32 accumulator
                + 3 * tb * tk_l * 4)                                # z1/z2 temporaries

    if B <= 16:
        tile_b, n_b = B, 1            # full-extent batch block (legal at any size)
    else:
        tile_b = 16
        for cand in (512, 384, 256, 192, 128, 96, 64, 48, 32, 16):
            if est(cand) <= budget:
                tile_b = cand
                break
        n_b = max(2, -(-B // tile_b))                       # >= 2 parallel steps (v7x)
        tile_b = min(tile_b, _round_up(-(-B // n_b), 16))
        n_b = -(-B // tile_b)

    kernel = functools.partial(dual_seq_kernel, hid=HID)
    out = pl.pallas_call(
        kernel,
        out_shape=jax.ShapeDtypeStruct((B, OUT_p), out_dtype),
        grid=(n_b, n_k),
        in_specs=[
            pl.BlockSpec((tile_b, IN), lambda i, k: (i, 0)),    # x    (streamed as-is)
            pl.BlockSpec((IN, tk_h), lambda i, k: (0, k)),      # W1^T K-block
            pl.BlockSpec((1, tk_h), lambda i, k: (0, k)),       # b1   K-block
            pl.BlockSpec((tile_b, tk_h), lambda i, k: (i, k)),  # d    (streamed as-is)
            pl.BlockSpec((tk_h, OUT_p), lambda i, k: (k, 0)),   # W2^T K-block
            pl.BlockSpec((1, OUT_p), lambda i, k: (0, 0)),      # b2
        ],
        out_specs=pl.BlockSpec((tile_b, OUT_p), lambda i, k: (i, 0)),
        scratch_shapes=[pltpu.VMEM((tile_b, OUT_p), jnp.float32)],
        compiler_params=pltpu.CompilerParams(
            dimension_semantics=("parallel", "arbitrary"),
            vmem_limit_bytes=int(budget)),
    )(x, w1t, b1r, d, w2t, b2r)

    return out if OUT_p == OUT else out[:, :OUT]


def dual_sequential_ref(x, w1, b1, d, w2, b2):
    z1 = x @ w1.T + b1
    z2 = d * z1
    return z2 @ w2.T + b2


if __name__ == "__main__":
    key = jax.random.PRNGKey(0)

    def run_case(case_key, B, IN, HID, OUT, tk_h=None):
        kx, kw1, kb1, kd, kw2, kb2 = jax.random.split(case_key, 6)
        x = jax.random.normal(kx, (B, IN), dtype=jnp.float32)
        w1 = jax.random.normal(kw1, (HID, IN), dtype=jnp.float32) * 0.1
        b1 = jax.random.normal(kb1, (HID,), dtype=jnp.float32) * 0.1
        d = jax.random.uniform(kd, (B, HID), dtype=jnp.float32)  # DualReLU coefficients
        w2 = jax.random.normal(kw2, (OUT, HID), dtype=jnp.float32) * 0.1
        b2 = jax.random.normal(kb2, (OUT,), dtype=jnp.float32) * 0.1

        params = pack_dual_sequential_params(w1, b1, w2, b2, tk_h=tk_h)  # one-time pack
        out = dual_sequential_forward(x, d, params)
        out = jax.block_until_ready(out)

        ref = dual_sequential_ref(x, w1, b1, d, w2, b2)
        assert out.shape == (B, OUT), out.shape
        err = float(jnp.max(jnp.abs(out - ref)))
        # bf16 operands with f32 accumulation -> bf16-appropriate tolerance.
        assert jnp.allclose(out, ref, atol=5e-2, rtol=5e-2), f"mismatch vs reference: {err}"

    k1, k2 = jax.random.split(key)
    # Single-K-step path: awkward dims (B % tile != 0, unaligned IN/HID/OUT),
    # 2 parallel batch tiles, streamed x/d with no HBM padding.
    run_case(k1, B=300, IN=32, HID=96, OUT=24)
    # K-tiled reduction path: forced tk_h=128 -> 2 "arbitrary" reduction steps with a
    # masked partial HID tail plus partial batch blocks.
    run_case(k2, B=70, IN=48, HID=200, OUT=40, tk_h=128)

    print("KERNEL_OK")
</pallas_src>

<mosaic_0001>
module attributes {stable_mosaic.version = 11 : i64} {
  func.func @dual_seq_kernel(%arg0: i32, %arg1: i32, %arg2: memref<160x32xf32, #tpu.memory_space<vmem>>, %arg3: memref<32x96xbf16, #tpu.memory_space<vmem>>, %arg4: memref<1x96xf32, #tpu.memory_space<vmem>>, %arg5: memref<160x96xf32, #tpu.memory_space<vmem>>, %arg6: memref<96x128xbf16, #tpu.memory_space<vmem>>, %arg7: memref<1x128xf32, #tpu.memory_space<vmem>>, %arg8: memref<160x128xf32, #tpu.memory_space<vmem>>, %arg9: memref<160x128xf32, #tpu.memory_space<vmem>>) attributes {dimension_semantics = [#tpu.dimension_semantics<parallel>, #tpu.dimension_semantics<arbitrary>], iteration_bounds = array<i64: 2, 1>, scalar_prefetch = 0 : i64, scratch_operands = 1 : i64, tpu.core_type = #tpu.core_type<tc>, window_params = [{transform_indices = @transform_0, window_bounds = array<i64: 160, 32>}, {transform_indices = @transform_1, window_bounds = array<i64: 32, 96>}, {transform_indices = @transform_2, window_bounds = array<i64: 1, 96>}, {transform_indices = @transform_3, window_bounds = array<i64: 160, 96>}, {transform_indices = @transform_4, window_bounds = array<i64: 96, 128>}, {pipeline_mode = #tpu.pipeline_mode<synchronous>, transform_indices = @transform_5, window_bounds = array<i64: 1, 128>}, {transform_indices = @transform_6, window_bounds = array<i64: 160, 128>}]} {
    %c0_i32 = arith.constant 0 : i32
    %0 = arith.cmpi eq, %arg1, %c0_i32 : i32
    %1 = arith.extui %0 : i1 to i32
    %c0_i32_0 = arith.constant 0 : i32
    %2 = arith.cmpi ne, %1, %c0_i32_0 : i32
    scf.if %2 {
      %cst_17 = arith.constant 0.000000e+00 : f32
      %21 = vector.broadcast %cst_17 : f32 to vector<160x128xf32>
      %c0_18 = arith.constant 0 : index
      %c0_19 = arith.constant 0 : index
      %22 = vector.load %arg9[%c0_18, %c0_19] : memref<160x128xf32, #tpu.memory_space<vmem>>, vector<160x128xf32>
      tpu.vector_store %arg9[%c0_18, %c0_19], %21 {strides = array<i32>} : memref<160x128xf32, #tpu.memory_space<vmem>>, vector<160x128xf32>,
    } else {
    }
    %c0 = arith.constant 0 : index
    %c0_1 = arith.constant 0 : index
    %3 = vector.load %arg2[%c0, %c0_1] : memref<160x32xf32, #tpu.memory_space<vmem>>, vector<160x32xf32>
    %4 = arith.truncf %3 : vector<160x32xf32> to vector<160x32xbf16>
    %c0_2 = arith.constant 0 : index
    %c0_3 = arith.constant 0 : index
    %5 = vector.load %arg3[%c0_2, %c0_3] : memref<32x96xbf16, #tpu.memory_space<vmem>>, vector<32x96xbf16>
    %cst = arith.constant dense<0.000000e+00> : vector<160x96xf32>
    %6 = tpu.matmul %4, %5, %cst {dimension_numbers = #tpu.dot_dimension_numbers<[1], [0], [0], [1], [0, 0, 1, 1], [], []>} : vector<160x32xbf16>, vector<32x96xbf16>, vector<160x96xf32> -> vector<160x96xf32>
    %c0_4 = arith.constant 0 : index
    %c0_5 = arith.constant 0 : index
    %7 = vector.load %arg4[%c0_4, %c0_5] : memref<1x96xf32, #tpu.memory_space<vmem>>, vector<1x96xf32>
    %8 = vector.broadcast %7 : vector<1x96xf32> to vector<160x96xf32>
    %9 = arith.addf %6, %8 : vector<160x96xf32>
    %c0_6 = arith.constant 0 : index
    %c0_7 = arith.constant 0 : index
    %10 = vector.load %arg5[%c0_6, %c0_7] : memref<160x96xf32, #tpu.memory_space<vmem>>, vector<160x96xf32>
    %11 = arith.mulf %10, %9 : vector<160x96xf32>
    %c0_8 = arith.constant 0 : index
    %c0_9 = arith.constant 0 : index
    %12 = vector.load %arg9[%c0_8, %c0_9] : memref<160x128xf32, #tpu.memory_space<vmem>>, vector<160x128xf32>
    %13 = arith.truncf %11 : vector<160x96xf32> to vector<160x96xbf16>
    %c0_10 = arith.constant 0 : index
    %c0_11 = arith.constant 0 : index
    %14 = vector.load %arg6[%c0_10, %c0_11] : memref<96x128xbf16, #tpu.memory_space<vmem>>, vector<96x128xbf16>
    %cst_12 = arith.constant dense<0.000000e+00> : vector<160x128xf32>
    %15 = tpu.matmul %13, %14, %cst_12 {dimension_numbers = #tpu.dot_dimension_numbers<[1], [0], [0], [1], [0, 0, 1, 1], [], []>} : vector<160x96xbf16>, vector<96x128xbf16>, vector<160x128xf32> -> vector<160x128xf32>
    %16 = arith.addf %12, %15 : vector<160x128xf32>
    %c0_13 = arith.constant 0 : index
    %c0_14 = arith.constant 0 : index
    %17 = vector.load %arg9[%c0_13, %c0_14] : memref<160x128xf32, #tpu.memory_space<vmem>>, vector<160x128xf32>
    tpu.vector_store %arg9[%c0_13, %c0_14], %16 {strides = array<i32>} : memref<160x128xf32, #tpu.memory_space<vmem>>, vector<160x128xf32>,
    %c0_i32_15 = arith.constant 0 : i32
    %18 = arith.cmpi eq, %arg1, %c0_i32_15 : i32
    %19 = arith.extui %18 : i1 to i32
    %c0_i32_16 = arith.constant 0 : i32
    %20 = arith.cmpi ne, %19, %c0_i32_16 : i32
    scf.if %20 {
      %c0_17 = arith.constant 0 : index
      %c0_18 = arith.constant 0 : index
      %21 = vector.load %arg9[%c0_17, %c0_18] : memref<160x128xf32, #tpu.memory_space<vmem>>, vector<160x128xf32>
      %c0_19 = arith.constant 0 : index
      %c0_20 = arith.constant 0 : index
      %22 = vector.load %arg7[%c0_19, %c0_20] : memref<1x128xf32, #tpu.memory_space<vmem>>, vector<1x128xf32>
      %23 = vector.broadcast %22 : vector<1x128xf32> to vector<160x128xf32>
      %24 = arith.addf %21, %23 : vector<160x128xf32>
      %c0_21 = arith.constant 0 : index
      %c0_22 = arith.constant 0 : index
      %25 = vector.load %arg8[%c0_21, %c0_22] : memref<160x128xf32, #tpu.memory_space<vmem>>, vector<160x128xf32>
      tpu.vector_store %arg8[%c0_21, %c0_22], %24 {strides = array<i32>} : memref<160x128xf32, #tpu.memory_space<vmem>>, vector<160x128xf32>,
    } else {
    }
    return
  }
  func.func @transform_0(%arg0: i32, %arg1: i32) -> (i32, i32) {
    %c0_i32 = arith.constant 0 : i32
    %c0_i32_0 = arith.constant 0 : i32
    return %arg0, %c0_i32 : i32, i32
  }
  func.func @transform_1(%arg0: i32, %arg1: i32) -> (i32, i32) {
    %c0_i32 = arith.constant 0 : i32
    %c0_i32_0 = arith.constant 0 : i32
    return %c0_i32, %arg1 : i32, i32
  }
  func.func @transform_2(%arg0: i32, %arg1: i32) -> (i32, i32) {
    %c0_i32 = arith.constant 0 : i32
    %c0_i32_0 = arith.constant 0 : i32
    return %c0_i32, %arg1 : i32, i32
  }
  func.func @transform_3(%arg0: i32, %arg1: i32) -> (i32, i32) {
    %c0_i32 = arith.constant 0 : i32
    return %arg0, %arg1 : i32, i32
  }
  func.func @transform_4(%arg0: i32, %arg1: i32) -> (i32, i32) {
    %c0_i32 = arith.constant 0 : i32
    %c0_i32_0 = arith.constant 0 : i32
    return %arg1, %c0_i32 : i32, i32
  }
  func.func @transform_5(%arg0: i32, %arg1: i32) -> (i32, i32) {
    %c0_i32 = arith.constant 0 : i32
    %c0_i32_0 = arith.constant 0 : i32
    %c0_i32_1 = arith.constant 0 : i32
    return %c0_i32, %c0_i32_0 : i32, i32
  }
  func.func @transform_6(%arg0: i32, %arg1: i32) -> (i32, i32) {
    %c0_i32 = arith.constant 0 : i32
    %c0_i32_0 = arith.constant 0 : i32
    return %arg0, %c0_i32 : i32, i32
  }
}

</mosaic_0001>

<bundles_post_ra>
// kernel: tpu_custom_call.1
= control target key start
LH: loop header
LB: loop body
LE: loop exit
PB: predicated region body
PF: predicated region fallthrough
CT: control target
= control target key end

     0   :  { %11 = vsyncpa [#allocation4], 0  ;;  %s1603_s0 = inlined_call_operand.vmem [shape: f32[300,32], index: 0, kind: input, shape index: {}]   ;;  %s1604_s1 = inlined_call_operand.vmem [shape: bf16[32,96], index: 1, kind: input, shape index: {}]   ;;  %s1605_s2 = inlined_call_operand.vmem [shape: f32[1,96], index: 2, kind: input, shape index: {}]   ;;  %s1606_s3 = inlined_call_operand.vmem [shape: f32[300,96], index: 3, kind: input, shape index: {}]   ;;  %s1607_s4 = inlined_call_operand.vmem [shape: bf16[96,128], index: 4, kind: input, shape index: {}]   ;;  %s1608_s5 = inlined_call_operand.vmem [shape: f32[1,128], index: 5, kind: input, shape index: {}]   ;;  %s1609_s6 = inlined_call_operand.hbm [shape: f32[300,128], index: 6, kind: output, shape index: {}]  }
   0x1   :  { %13 = vsyncpa [#allocation4 + $0x1], 0  ;;  %s1299_s21 = smov 0   ;;  %s1301_s22 = smov 0  }
   0x2   :  { %s1303_s23 = smov 0   ;;  %s1305_s24 = smov 0  }
   0x3   :  { %s1307_s25 = smov 0   ;;  %s1309_s26 = smov 0  }
   0x4 LB: > { %s1025_s27 = sadd.s32 4294967295, %s1259_s26   ;;  %s1026_s28 = sadd.s32 4294967294, %s1259_s26   ;;  %s1259_s26 = sphi %s1309_s26, %s19_s26   ;;  %s1255_s25 = sphi %s1307_s25, %s1619_s25   ;;  %s1251_s24 = sphi %s1305_s24, %s1618_s24   ;;  %s1247_s23 = sphi %s1303_s23, %s1617_s23   ;;  %s1243_s22 = sphi %s1301_s22, %s1616_s22   ;;  %s1239_s21 = sphi %s1299_s21, %s1615_s21  }
   0x5   : > { %s31_s29 = sadd.s32 1, %s1255_s25  ;;  %s191_s30 = sadd.s32 1, %s1247_s23 }
   0x6   : > { %p33_p0 = scmp.ge.s32.totalorder %s31_s29, 2  ;;  %p201_p1 = scmp.ne.s32.totalorder %s1247_s23, %s1243_s22 }
   0x7   : > { %p202_p2 = scmp.eq.s32.totalorder %s1025_s27, 1  ;;  %p207_p3 = scmp.ne.s32.totalorder %s1243_s22, %s1239_s21 }
   0x8   : > { %s1621_s29 = smov (%p33_p0, %s31_s29), 0  ;;  %p208_p5 = scmp.eq.s32.totalorder %s1026_s28, 1 }
   0x9   : > { %p1339_p4 = por %p202_p2, %p201_p1  ;;  %s188_s8 = ssub.s32 %s1255_s25, %s1621_s29 }
   0xa   : > { %p1032_p6 = scmp.ge.s32.totalorder %s1259_s26, 1  ;;  %p189_p7 = scmp.eq.s32.totalorder %s188_s8, 0 }
   0xb   : > { %p1346_p8 = por %p208_p5, %p207_p3  ;;  %p288_p9 = scmp.lt.s32.totalorder %s1259_s26, 3 }
   0xc   : > { %s1352_s10 = scalar_select %p189_p7, %s1247_s23, %s191_s30  }
   0xd   : > { %p289_p10 = pnand %p1032_p6, %p288_p9 }
   0xe   : > { %s1358_s13 = smul.u32 (!%p289_p10), 20, %s1251_s24 }
   0xf   : > { %292 = sbr.rel (%p289_p10) target bundleno = 487 (0x1e7), region = 44 }
  0x10   : > { %p351_p11 = scmp.lt.s32.totalorder (!%p289_p10), %s1358_s13, 37 }
  0x14   : > { %v1095_v0 = vld [vmem:[%s1604_s1 + $0x8] sm:$0xff]  ;;  %v1094_v1 = vld [vmem:[%s1604_s1] sm:$0xff]  ;;  %s1365_s16 = scalar_select %p351_p11, %s1358_s13, 37  ;;  %vm470_vm0 = vcmask 261120   ;;  %v1099_v31 = vld [vmem:[%s1607_s4 + $0x18] sm:$0xff]  ;;  %vm678_vm1 = vcmask 785408  }
  0x15   : > { %507 = vmatpush.bf16.msra.mxu0 %v1095_v0  ;;  %1103 = vmatpush.bf16.msra.mxu3 %v1095_v0  ;;  %v1101_v17 = vld [vmem:[%s1607_s4 + $0x28] sm:$0xff]  ;;  %v1100_v18 = vld [vmem:[%s1607_s4 + $0x20] sm:$0xff]  ;;  %v1098_v32 = vld [vmem:[%s1607_s4 + $0x10] sm:$0xff]  ;;  %s884_s27 = ssub.s32 (%p1339_p4), 38, %s1358_s13 }
  0x16   : > { %s1033_s17 = sshll.u32 %s1365_s16, 3  ;;  %711 = vmatpush.bf16.msra.mxu1 %v1101_v17  ;;  %1105 = vmatpush.bf16.msra.mxu2 %v1101_v17  ;;  %v1097_v36 = vld [vmem:[%s1607_s4 + $0x8] sm:$0xff]  ;;  %v1096_v37 = vld [vmem:[%s1607_s4] sm:$0xff]  ;;  %s343_s16 = sand.u32 1, %s1243_s22  }
  0x17   : > { %s1373_s20 = scalar_lea.vmem %s1603_s0, %s1033_s17  ;;  %v1426_v39 = vld [vmem:[%s1605_s2] ss:$0 sm:$0xff]  ;;  %s1433_s12 = scalar_lea.vmem %s1606_s3, %s1033_s17 }
  0x18   : > { %v420_v2 = vld [vmem:[%s1373_s20] sm:$0xff]  ;;  %v421_v3 = vld [vmem:[%s1373_s20 + $0x8] sm:$0xff]  ;;  %v422_v5 = vld [vmem:[%s1373_s20 + $0x10] sm:$0xff]  ;;  %s1111_s17 = smul.u32 160, %s343_s16  ;;  %s1537_s19 = scalar_lea.sflag [#allocation4], %s343_s16 }
  0x19   : > { %508 = vmatpush.bf16.msra.mxu0 %v1094_v1  ;;  %1104 = vmatpush.bf16.msra.mxu3 %v1094_v1  ;;  %v440_v4 = vpack.c.bf16 %v421_v3, %v420_v2  ;;  %v423_v6 = vld [vmem:[%s1373_s20 + $0x18] sm:$0xff]  ;;  %v424_v8 = vld [vmem:[%s1373_s20 + $0x20] sm:$0xff]  ;;  %v425_v9 = vld [vmem:[%s1373_s20 + $0x28] sm:$0xff]  ;;  %p885_p12 = scmp.lt.s32.totalorder (%p1339_p4), %s884_s27, 20 }
  0x1a   : > { %v441_v7 = vpack.c.bf16 %v423_v6, %v422_v5  ;;  %v442_v10 = vpack.c.bf16 %v425_v9, %v424_v8  ;;  %v426_v11 = vld [vmem:[%s1373_s20 + $0x30] sm:$0xff]  ;;  %v427_v12 = vld [vmem:[%s1373_s20 + $0x38] sm:$0xff]  ;;  %v432_v14 = vld [vmem:[%s1373_s20 + $0x60] sm:$0xff]  ;;  %712 = vmatpush.bf16.msra.mxu1 %v1100_v18  ;;  %1106 = vmatpush.bf16.msra.mxu2 %v1100_v18  ;;  %s1488_s18 = scalar_lea.vmem [#allocation3], %s1111_s17 }
  0x1b   : > { %v443_v13 = vpack.c.bf16 %v427_v12, %v426_v11  ;;  %v433_v15 = vld [vmem:[%s1373_s20 + $0x68] sm:$0xff]  ;;  %v428_v19 = vld [vmem:[%s1373_s20 + $0x40] sm:$0xff]  ;;  %v434_v21 = vld [vmem:[%s1373_s20 + $0x70] sm:$0xff] }
  0x1c   : > { %1043 = vmatmul.msk.bf16.vlgmr.msra.gmra.mxu0 %vm470_vm0, %v440_v4  ;;  %v446_v16 = vpack.c.bf16 %v433_v15, %v432_v14  ;;  %v429_v20 = vld [vmem:[%s1373_s20 + $0x48] sm:$0xff]  ;;  %v435_v22 = vld [vmem:[%s1373_s20 + $0x78] sm:$0xff]  ;;  %v430_v25 = vld [vmem:[%s1373_s20 + $0x50] sm:$0xff] }
  0x1d   : > { %v444_v23 = vpack.c.bf16 %v429_v20, %v428_v19  ;;  %v447_v24 = vpack.c.bf16 %v435_v22, %v434_v21  ;;  %v431_v26 = vld [vmem:[%s1373_s20 + $0x58] sm:$0xff]  ;;  %v436_v27 = vld [vmem:[%s1373_s20 + $0x80] sm:$0xff]  ;;  %v437_v28 = vld [vmem:[%s1373_s20 + $0x88] sm:$0xff] }
  0x1e   : > { %1049 = vmatmul.msk.bf16.vlgmr.msra.gmra.mxu3 %vm470_vm0, %v446_v16  ;;  %v445_v29 = vpack.c.bf16 %v431_v26, %v430_v25  ;;  %v448_v30 = vpack.c.bf16 %v437_v28, %v436_v27  ;;  %713 = vmatpush.bf16.msra.mxu1 %v1099_v31  ;;  %v438_v33 = vld [vmem:[%s1373_s20 + $0x90] sm:$0xff]  ;;  %v439_v34 = vld [vmem:[%s1373_s20 + $0x98] sm:$0xff]  ;;  %v560_v41 = vld [vmem:[%s1433_s12] sm:$0xff] }
  0x1f   : > { %1107 = vmatpush.bf16.msra.mxu2 %v1099_v31  ;;  %v449_v35 = vpack.c.bf16 %v439_v34, %v438_v33  ;;  %v561_v43 = vld [vmem:[%s1433_s12 + $0x8] sm:$0xff]  ;;  %v562_v50 = vld [vmem:[%s1433_s12 + $0x10] sm:$0xff]  ;;  %v563_v52 = vld [vmem:[%s1433_s12 + $0x18] sm:$0xff] }
  0x20   : > { %v564_v59 = vld [vmem:[%s1433_s12 + $0x20] sm:$0xff]  ;;  %v565_v61 = vld [vmem:[%s1433_s12 + $0x28] sm:$0xff]  ;;  %v566_v4 = vld [vmem:[%s1433_s12 + $0x30] sm:$0xff] }
  0x21   : > { %v567_v6 = vld [vmem:[%s1433_s12 + $0x38] sm:$0xff]  ;;  %v569_v15 = vld [vmem:[%s1433_s12 + $0x48] sm:$0xff]  ;;  %v572_v34 = vld [vmem:[%s1433_s12 + $0x60] sm:$0xff] }
  0x22   : > { %714 = vmatpush.bf16.msra.mxu1 %v1098_v32  ;;  %v571_v26 = vld [vmem:[%s1433_s12 + $0x58] sm:$0xff] }
  0x23   : > { %1108 = vmatpush.bf16.msra.mxu2 %v1098_v32 }
  0x26   : > { %715 = vmatpush.bf16.msra.mxu1 %v1097_v36 }
  0x27   : > { %1109 = vmatpush.bf16.msra.mxu2 %v1097_v36 }
  0x2a   : > { %716 = vmatpush.bf16.msra.mxu1 %v1096_v37 }
  0x2b   : > { %1110 = vmatpush.bf16.msra.mxu2 %v1096_v37 }
  0x2c   : > { %1044 = vmatmul.msk.bf16.gmra.mxu0 %vm470_vm0, %v441_v7 }
  0x2e   : > { %1050 = vmatmul.msk.bf16.gmra.mxu3 %vm470_vm0, %v447_v24  ;;  %v570_v24 = vld [vmem:[%s1433_s12 + $0x50] sm:$0xff] }
  0x3c   : > { %1045 = vmatmul.msk.bf16.gmra.mxu0 %vm470_vm0, %v442_v10 }
  0x3e   : > { %1051 = vmatmul.msk.bf16.gmra.mxu3 %vm470_vm0, %v448_v30 }
  0x4c   : > { %1046 = vmatmul.msk.bf16.gmra.mxu0 %vm470_vm0, %v443_v13  ;;  %v568_v13 = vld [vmem:[%s1433_s12 + $0x40] sm:$0xff] }
  0x4e   : > { %1052 = vmatmul.msk.bf16.gmra.mxu3 %vm470_vm0, %v449_v35  ;;  %v573_v35 = vld [vmem:[%s1433_s12 + $0x68] sm:$0xff] }
  0x5c   : > { %1047 = vmatmul.msk.bf16.gmra.mxu0 %vm470_vm0, %v444_v23 }
  0x6c   : > { %1048 = vmatmul.msk.bf16.gmra.mxu0 %vm470_vm0, %v445_v29 }
  0x99   : > { %v510_v38 = vpop.f32.mrf.mxu0 }
  0x9a   : > { %v511_v40 = vadd.f32 %v1426_v39, %v510_v38 }
  0x9c   : > { %v580_v45 = vmul.f32 %v560_v41, %v511_v40 }
  0xa1   : > { %v512_v42 = vpop.f32.mrf.mxu0  ;;  %v540_v19 = vpop.f32.mrf.mxu3 }
  0xa2   : > { %v513_v44 = vadd.f32 %v1426_v39, %v512_v42  ;;  %v541_v32 = vadd.f32 %v1426_v39, %v540_v19 }
  0xa4   : > { %v581_v46 = vmul.f32 %v561_v43, %v513_v44  ;;  %v592_v36 = vmul.f32 %v572_v34, %v541_v32  ;;  %v574_v44 = vld [vmem:[%s1433_s12 + $0x70] sm:$0xff] }
  0xa6   : > { %v620_v47 = vpack.c.bf16 %v581_v46, %v580_v45  ;;  %v575_v45 = vld [vmem:[%s1433_s12 + $0x78] sm:$0xff] }
  0xa8   : > { %1077 = vmatmul.msk.bf16.vlgmr.msra.gmra.mxu1 %vm678_vm1, %v620_v47 }
  0xa9   : > { %v515_v48 = vpop.f32.mrf.mxu0  ;;  %v542_v22 = vpop.f32.mrf.mxu3 }
  0xaa   : > { %v516_v49 = vadd.f32 %v1426_v39, %v515_v48  ;;  %v543_v33 = vadd.f32 %v1426_v39, %v542_v22 }
  0xac   : > { %v582_v54 = vmul.f32 %v562_v50, %v516_v49  ;;  %v593_v37 = vmul.f32 %v573_v35, %v543_v33 }
  0xae   : > { %v626_v40 = vpack.c.bf16 %v593_v37, %v592_v36 }
  0xb1   : > { %v517_v51 = vpop.f32.mrf.mxu0  ;;  %v545_v31 = vpop.f32.mrf.mxu3 }
  0xb2   : > { %v518_v53 = vadd.f32 %v1426_v39, %v517_v51  ;;  %v546_v42 = vadd.f32 %v1426_v39, %v545_v31 }
  0xb4   : > { %v583_v55 = vmul.f32 %v563_v52, %v518_v53  ;;  %v594_v46 = vmul.f32 %v574_v44, %v546_v42  ;;  %v576_v52 = vld [vmem:[%s1433_s12 + $0x80] sm:$0xff]  ;;  %v577_v53 = vld [vmem:[%s1433_s12 + $0x88] sm:$0xff] }
  0xb6   : > { %v621_v56 = vpack.c.bf16 %v583_v55, %v582_v54 }
  0xb8   : > { %1078 = vmatmul.msk.bf16.gmra.mxu1 %vm678_vm1, %v621_v56 }
  0xb9   : > { %v520_v57 = vpop.f32.mrf.mxu0  ;;  %v547_v38 = vpop.f32.mrf.mxu3 }
  0xba   : > { %v521_v58 = vadd.f32 %v1426_v39, %v520_v57  ;;  %v548_v43 = vadd.f32 %v1426_v39, %v547_v38  ;;  %v1485_v57 = vld [vmem:[%s1608_s5] ss:$0 sm:$0xff] }
  0xbc   : > { %v584_v63 = vmul.f32 %v564_v59, %v521_v58  ;;  %v595_v47 = vmul.f32 %v575_v45, %v548_v43 }
  0xbe   : > { %v627_v48 = vpack.c.bf16 %v595_v47, %v594_v46 }
  0xc1   : > { %v522_v60 = vpop.f32.mrf.mxu0  ;;  %v550_v41 = vpop.f32.mrf.mxu3 }
  0xc2   : > { %v523_v62 = vadd.f32 %v1426_v39, %v522_v60  ;;  %v551_v50 = vadd.f32 %v1426_v39, %v550_v41 }
  0xc4   : > { %v585_v0 = vmul.f32 %v565_v61, %v523_v62  ;;  %v596_v55 = vmul.f32 %v576_v52, %v551_v50 }
  0xc6   : > { %v622_v1 = vpack.c.bf16 %v585_v0, %v584_v63 }
  0xc8   : > { %1079 = vmatmul.msk.bf16.gmra.mxu1 %vm678_vm1, %v622_v1 }
  0xc9   : > { %v525_v2 = vpop.f32.mrf.mxu0  ;;  %v552_v49 = vpop.f32.mrf.mxu3 }
  0xca   : > { %v526_v3 = vadd.f32 %v1426_v39, %v525_v2  ;;  %v553_v51 = vadd.f32 %v1426_v39, %v552_v49  ;;  %v578_v2 = vld [vmem:[%s1433_s12 + $0x90] sm:$0xff] }
  0xcc   : > { %v586_v8 = vmul.f32 %v566_v4, %v526_v3  ;;  %v597_v56 = vmul.f32 %v577_v53, %v553_v51  ;;  %v579_v3 = vld [vmem:[%s1433_s12 + $0x98] sm:$0xff] }
  0xce   : > { %v628_v60 = vpack.c.bf16 %v597_v56, %v596_v55 }
  0xd1   : > { %v527_v5 = vpop.f32.mrf.mxu0  ;;  %v555_v54 = vpop.f32.mrf.mxu3 }
  0xd2   : > { %v528_v7 = vadd.f32 %v1426_v39, %v527_v5  ;;  %v556_v63 = vadd.f32 %v1426_v39, %v555_v54 }
  0xd4   : > { %v587_v9 = vmul.f32 %v567_v6, %v528_v7  ;;  %v598_v4 = vmul.f32 %v578_v2, %v556_v63 }
  0xd6   : > { %v623_v10 = vpack.c.bf16 %v587_v9, %v586_v8 }
  0xd8   : > { %1080 = vmatmul.msk.bf16.gmra.mxu1 %vm678_vm1, %v623_v10 }
  0xd9   : > { %v530_v11 = vpop.f32.mrf.mxu0  ;;  %v557_v61 = vpop.f32.mrf.mxu3 }
  0xda   : > { %v531_v12 = vadd.f32 %v1426_v39, %v530_v11  ;;  %v558_v0 = vadd.f32 %v1426_v39, %v557_v61 }
  0xdc   : > { %v588_v17 = vmul.f32 %v568_v13, %v531_v12  ;;  %v599_v5 = vmul.f32 %v579_v3, %v558_v0 }
  0xde   : > { %v629_v8 = vpack.c.bf16 %v599_v5, %v598_v4 }
  0xe1   : > { %v532_v14 = vpop.f32.mrf.mxu0 }
  0xe2   : > { %v533_v16 = vadd.f32 %v1426_v39, %v532_v14 }
  0xe4   : > { %v589_v18 = vmul.f32 %v569_v15, %v533_v16 }
  0xe6   : > { %v624_v20 = vpack.c.bf16 %v589_v18, %v588_v17 }
  0xe8   : > { %1081 = vmatmul.msk.bf16.gmra.mxu1 %vm678_vm1, %v624_v20 }
  0xe9   : > { %v535_v21 = vpop.f32.mrf.mxu0 }
  0xea   : > { %v536_v23 = vadd.f32 %v1426_v39, %v535_v21 }
  0xec   : > { %v590_v28 = vmul.f32 %v570_v24, %v536_v23 }
  0xf1   : > { %v537_v25 = vpop.f32.mrf.mxu0 }
  0xf2   : > { %v538_v27 = vadd.f32 %v1426_v39, %v537_v25 }
  0xf4   : > { %v591_v29 = vmul.f32 %v571_v26, %v538_v27 }
  0xf6   : > { %v625_v30 = vpack.c.bf16 %v591_v29, %v590_v28 }
  0xf8   : > { %1082 = vmatmul.msk.bf16.vlgmr.msra.gmra.mxu2 %vm678_vm1, %v625_v30 }
 0x108   : > { %1083 = vmatmul.msk.bf16.gmra.mxu2 %vm678_vm1, %v626_v40 }
 0x118   : > { %1084 = vmatmul.msk.bf16.gmra.mxu2 %vm678_vm1, %v627_v48 }
 0x125   : > { %v718_v58 = vpop.f32.mrf.mxu1 }
 0x126   : > { %v835_v59 = vadd.f32 %v1485_v57, %v718_v58 }
 0x128   : > { %855 = vst [vmem:[%s1488_s18] sm:$0xff] %v835_v59  ;;  %1085 = vmatmul.msk.bf16.gmra.mxu2 %vm678_vm1, %v628_v60 }
 0x12d   : > { %v720_v62 = vpop.f32.mrf.mxu1 }
 0x12e   : > { %v836_v1 = vadd.f32 %v1485_v57, %v720_v62 }
 0x130   : > { %856 = vst [vmem:[%s1488_s18 + $0x8] sm:$0xff] %v836_v1 }
 0x135   : > { %v723_v6 = vpop.f32.mrf.mxu1 }
 0x136   : > { %v837_v7 = vadd.f32 %v1485_v57, %v723_v6 }
 0x138   : > { %857 = vst [vmem:[%s1488_s18 + $0x10] sm:$0xff] %v837_v7  ;;  %1086 = vmatmul.msk.bf16.gmra.mxu2 %vm678_vm1, %v629_v8 }
 0x13d   : > { %v725_v9 = vpop.f32.mrf.mxu1 }
 0x13e   : > { %v838_v39 = vadd.f32 %v1485_v57, %v725_v9 }
 0x140   : > { %858 = vst [vmem:[%s1488_s18 + $0x18] sm:$0xff] %v838_v39 }
 0x145   : > { %v728_v10 = vpop.f32.mrf.mxu1 }
 0x146   : > { %v839_v11 = vadd.f32 %v1485_v57, %v728_v10 }
 0x148   : > { %859 = vst [vmem:[%s1488_s18 + $0x20] sm:$0xff] %v839_v11 }
 0x14d   : > { %v730_v12 = vpop.f32.mrf.mxu1 }
 0x14e   : > { %v840_v13 = vadd.f32 %v1485_v57, %v730_v12 }
 0x150   : > { %860 = vst [vmem:[%s1488_s18 + $0x28] sm:$0xff] %v840_v13 }
 0x155   : > { %v733_v14 = vpop.f32.mrf.mxu1 }
 0x156   : > { %v841_v15 = vadd.f32 %v1485_v57, %v733_v14 }
 0x158   : > { %861 = vst [vmem:[%s1488_s18 + $0x30] sm:$0xff] %v841_v15 }
 0x15d   : > { %v735_v16 = vpop.f32.mrf.mxu1 }
 0x15e   : > { %v842_v17 = vadd.f32 %v1485_v57, %v735_v16 }
 0x160   : > { %862 = vst [vmem:[%s1488_s18 + $0x38] sm:$0xff] %v842_v17 }
 0x165   : > { %v738_v18 = vpop.f32.mrf.mxu1 }
 0x166   : > { %v843_v19 = vadd.f32 %v1485_v57, %v738_v18 }
 0x168   : > { %863 = vst [vmem:[%s1488_s18 + $0x40] sm:$0xff] %v843_v19 }
 0x16d   : > { %v740_v20 = vpop.f32.mrf.mxu1 }
 0x16e   : > { %v844_v21 = vadd.f32 %v1485_v57, %v740_v20 }
 0x170   : > { %864 = vst [vmem:[%s1488_s18 + $0x48] sm:$0xff] %v844_v21 }
 0x17b   : > { %v743_v22 = vpop.f32.mrf.mxu2 }
 0x17c   : > { %v845_v23 = vadd.f32 %v1485_v57, %v743_v22 }
 0x17e   : > { %865 = vst [vmem:[%s1488_s18 + $0x50] sm:$0xff] %v845_v23 }
 0x183   : > { %v745_v24 = vpop.f32.mrf.mxu2 }
 0x184   : > { %v846_v25 = vadd.f32 %v1485_v57, %v745_v24 }
 0x186   : > { %866 = vst [vmem:[%s1488_s18 + $0x58] sm:$0xff] %v846_v25 }
 0x18b   : > { %v748_v26 = vpop.f32.mrf.mxu2 }
 0x18c   : > { %v847_v27 = vadd.f32 %v1485_v57, %v748_v26 }
 0x18e   : > { %867 = vst [vmem:[%s1488_s18 + $0x60] sm:$0xff] %v847_v27 }
 0x193   : > { %v750_v28 = vpop.f32.mrf.mxu2 }
 0x194   : > { %v848_v29 = vadd.f32 %v1485_v57, %v750_v28 }
 0x196   : > { %868 = vst [vmem:[%s1488_s18 + $0x68] sm:$0xff] %v848_v29 }
 0x19b   : > { %v753_v30 = vpop.f32.mrf.mxu2 }
 0x19c   : > { %v849_v31 = vadd.f32 %v1485_v57, %v753_v30 }
 0x19e   : > { %869 = vst [vmem:[%s1488_s18 + $0x70] sm:$0xff] %v849_v31 }
 0x1a3   : > { %v755_v32 = vpop.f32.mrf.mxu2 }
 0x1a4   : > { %v850_v33 = vadd.f32 %v1485_v57, %v755_v32 }
 0x1a6   : > { %870 = vst [vmem:[%s1488_s18 + $0x78] sm:$0xff] %v850_v33 }
 0x1ab   : > { %v758_v34 = vpop.f32.mrf.mxu2 }
 0x1ac   : > { %v851_v35 = vadd.f32 %v1485_v57, %v758_v34 }
 0x1ae   : > { %871 = vst [vmem:[%s1488_s18 + $0x80] sm:$0xff] %v851_v35 }
 0x1b3   : > { %v760_v36 = vpop.f32.mrf.mxu2 }
 0x1b4   : > { %v852_v37 = vadd.f32 %v1485_v57, %v760_v36 }
 0x1b6   : > { %872 = vst [vmem:[%s1488_s18 + $0x88] sm:$0xff] %v852_v37 }
 0x1bb   : > { %v763_v38 = vpop.f32.mrf.mxu2 }
 0x1bc   : > { %v853_v40 = vadd.f32 %v1485_v57, %v763_v38 }
 0x1be   : > { %873 = vst [vmem:[%s1488_s18 + $0x90] sm:$0xff] %v853_v40 }
 0x1c2   : > { %882 = sbr.rel (!%p1339_p4) target bundleno = 487 (0x1e7), region = 56 }
 0x1c3   : > { %v765_v41 = vpop.f32.mrf.mxu2 }
 0x1c4   : > { %v854_v42 = vadd.f32 %v1485_v57, %v765_v41 }
 0x1c6   : > { %874 = vst [vmem:[%s1488_s18 + $0x98] sm:$0xff] %v854_v42 }
 0x1c7   : > { %s1623_s27 = smov (!%p885_p12, %s884_s27), 20 }
 0x1c8   : > { %s1087_s28 = sshll.u32 %s1623_s27, 3 }
 0x1c9   : > { %s888_s20 = ssub.s32 160, %s1087_s28 }
 0x1ca   : > { %s889_s30 = sshll.u32 %s888_s20, 4 }
 0x1cb   : > { %890 = vsyncadd %s1537_s19, %s889_s30  ;;  %p1546_p13 = scmp.ne.s32.totalorder %s1087_s28, 0  ;;  %s1102_s7 = smul.u32 160, %s1251_s24 }
 0x1cc   : > { %s895_s11 = sshll.u32 %s1488_s18, 4  ;;  %s1610_s13 = sshll.u32 %s1623_s27, 7  ;;  %s1556_s11 = int_to_ptr.vmem [resolvable:$true] %s895_s11 }
 0x1cd   : > { %s893_s17 = scalar_lea.hbm %s1609_s6, %s1102_s7  ;;  %s1170_s15 = sshra.s32 %s1556_s11, 4  ;;  %s1171_s15 = int_to_ptr.vmem [resolvable:$true] %s1170_s15 }
 0x1ce   : > { %s897_s14 = sshll.u32 %s893_s17, 4  ;;  %s1172_s28 = sshrl.u32 %s1610_s13, 4  ;;  %s1558_s14 = int_to_ptr.hbm [resolvable:$true] %s897_s14 }
 0x1cf   : > { %s1177_s20 = scalar_lea.vmem %s1171_s15, %s1172_s28  ;;  %s1261_s24 = smov [#allocation3]  }
 0x1d0   : > { %p1178_p0 = scmp.ne.s32.totalorder %s1171_s15, %s1177_s20  ;;  %s1181_s18 = scalar_lea.vmem %s1261_s24, 320 }
 0x1d1   : > { %p1183_p3 = scmp.lt.s32.totalorder %s1181_s18, %s1177_s20 }
 0x1d2   : > { %p1179_p1 = pnand %p1178_p0, %p1546_p13 }
 0x1d4   : > { %p1180_p2 = pneg %p1179_p1 }
 0x1d6   : > { %p1185_p4 = pnand %p1183_p3, %p1180_p2 }
 0x1d8   : > { %1188 = shalt.err (!%p1185_p4)
}
 0x1d9   : > { %s1189_s30 = sshra.s32 %s1558_s14, 4  ;;  %s1200_s17 = scalar_lea.hbm %s1609_s6, 304  ;;  %s1190_s30 = int_to_ptr.hbm [resolvable:$true] %s1189_s30 }
 0x1da   : > { %s1196_s7 = scalar_lea.hbm %s1190_s30, %s1172_s28  ;;  %p1201_p9 = scmp.lt.s32.totalorder %s1190_s30, %s1609_s6 }
 0x1db   : > { %p1197_p5 = scmp.ne.s32.totalorder %s1190_s30, %s1196_s7  ;;  %p1202_p10 = scmp.lt.s32.totalorder %s1200_s17, %s1196_s7 }
 0x1dd   : > { %p1198_p6 = pnand %p1197_p5, %p1546_p13  ;;  %p1203_p11 = por %p1202_p10, %p1201_p9 }
 0x1df   : > { %p1199_p7 = pneg %p1198_p6 }
 0x1e1   : > { %p1204_p12 = pnand %p1203_p11, %p1199_p7 }
 0x1e3   : > { %1207 = shalt.err (!%p1204_p12)
}
 0x1e4   : > { %s1262_s20 = smov 128   ;;  %s1263_s28 = smov 8  }
 0x1e5   : > { %s1614_s24 = sshll.u32 %s1623_s27, 7 }
 0x1e6   : > { %903 = dma.vmem_to_hbm [thread:$0]  (%p1546_p13), %s1556_s11, %s1614_s24, %s1558_s14, %s1537_s19, %s1262_s20, %s1262_s20, %s1263_s28  }
 0x1e7 PF: > { %p1117_p0 = scmp.ge.s32.totalorder %s1259_s26, 2  ;;  %s912_s13 = sand.u32 1, %s1239_s21  }
 0x1e8   : > { %s913_s18 = scalar_lea.sflag [#allocation4], %s912_s13 }
 0x1e9   : > { %p1114_p1 = pnand %p1117_p0, %p1346_p8 }
 0x1eb   : > { %p1115_p2 = pneg %p1114_p1 }
 0x1ed   : > { %1234 = dma.done.wait (%p1115_p2), %s913_s18, 2560  }
 0x1ee   : > { %1236 = vsyncadd (%p1115_p2), %s913_s18, 4294964736  ;;  %s19_s26 = sadd.s32 1, %s1259_s26   ;;  %s1615_s21 = smov %s1243_s22 }
 0x1ef   : > { %p16_p3 = scmp.ge.s32.totalorder %s19_s26, 4   ;;  %s1616_s22 = smov %s1247_s23 }
 0x1f0   : > { %s1617_s23 = smov %s1352_s10  ;;  %s1618_s24 = smov %s1255_s25 }
 0x1f1   : > { %s1619_s25 = smov %s1621_s29  ;;  %18 = sbr.rel (!%p16_p3) target bundleno = 4 (0x4), region = 99 }
 0x1f6   :  { %919 = vsyncpa [#allocation4], 1 }
 0x1f7   :  { %921 = vsyncpa [#allocation4 + $0x1], 1 }

</bundles_post_ra>
